<compile_context>
chip_gen: v7x
topology: tpu7x:2x2x1
jax: 0.10.0
libtpu: 0.0.40
codegen_flags: <defaults>
</compile_context>

<pallas_src>
import jax
import jax.numpy as jnp
import numpy as np
from jax.experimental import pallas as pl
from jax.experimental.pallas import tpu as pltpu

SAMPLE_RATE = 16000          # "sample_rate must be set in _load_model"
FRAME_LEN = 128              # frame size (lane-aligned)
HIDDEN = 32                  # projection width of the synthetic model
FOLD = 4                     # frames folded per row -> 128-lane-dense output
FOLD_IN = FOLD * FRAME_LEN   # 512  (contraction dim seen by the MXU)
FOLD_OUT = FOLD * HIDDEN     # 128  (output lanes, unmasked stores)
MAX_TM = 1024                # folded rows per tile (= 4096 raw frames)
MIN_BLOCKS = 4               # aim for >= this many grid blocks (v7x: 2 TCs)


def _round_up(x: int, m: int) -> int:
    return (x + m - 1) // m * m


def _choose_tm(n_fold: int) -> int:
    """Pick the block row count: big enough to amortize per-step overhead,
    small enough to keep >= MIN_BLOCKS blocks in flight for megacore, always
    (sublane, lane)-legal (multiple of 16, or equal to the full dim)."""
    if n_fold <= 16:
        return n_fold                         # single block == full dim (legal)
    target = pl.cdiv(n_fold, MIN_BLOCKS)
    return max(16, min(MAX_TM, _round_up(target, 16)))


def _linear_kernel(x_ref, w_ref, b_ref, o_ref):
    # Stream f32 frames, cast to bf16 on the VPU (hidden under the DMA since
    # the kernel is memory bound), f32 accumulate on the MXU, single broadcast
    # bias add, cast to bf16 at the store (128-lane unmasked stores).
    x = x_ref[...].astype(jnp.bfloat16)
    acc = jnp.dot(x, w_ref[...], preferred_element_type=jnp.float32)
    o_ref[...] = (acc + b_ref[...]).astype(o_ref.dtype)


def load_model(key):
    """Synthetic _load_model(): deterministic params + kernel-ready layout.

    The block-diagonal (512, 128) bf16 weight and the lane-tiled (1, 128) f32
    bias are built ONCE here (model load), not per forward call.
    """
    kw, kb = jax.random.split(key)
    weight = jax.random.normal(kw, (FRAME_LEN, HIDDEN), jnp.float32) * 0.05
    bias = jax.random.normal(kb, (HIDDEN,), jnp.float32) * 0.01
    w_big = jax.scipy.linalg.block_diag(*([weight] * FOLD)).astype(jnp.bfloat16)
    b_big = jnp.tile(bias, FOLD).reshape(1, FOLD_OUT).astype(jnp.float32)
    return weight, bias, w_big, b_big


def base_wrapper_forward(waveform: jax.Array, w_big: jax.Array,
                         b_big: jax.Array,
                         out_dtype=jnp.bfloat16) -> jax.Array:
    """Synthetic BaseWrapper.forward: frame waveform and apply linear model.

    waveform: (B, T) float32, T divisible by FRAME_LEN
    returns:  (B, T // FRAME_LEN, HIDDEN) in `out_dtype` (bf16 by default to
              halve output HBM traffic; upcast in the consumer if needed)
    """
    B, T = waveform.shape
    assert T % FRAME_LEN == 0, "synthetic model frames the waveform in 128s"
    num_frames = T // FRAME_LEN
    N = B * num_frames

    frames = waveform.reshape(N, FRAME_LEN)          # free row-major framing
    rem = (-N) % FOLD
    if rem:
        # TODO(synk): only non-FOLD-aligned frame counts pay this extra copy;
        # could be absorbed into the kernel with a masked tail block if needed.
        frames = jnp.pad(frames, ((0, rem), (0, 0)))
    n_fold = frames.shape[0] // FOLD
    x_fold = frames.reshape(n_fold, FOLD_IN)         # same bytes, free

    tm = _choose_tm(n_fold)
    grid = (pl.cdiv(n_fold, tm),)                    # ragged tail masked by Pallas

    cost = pl.CostEstimate(
        flops=2 * n_fold * FOLD_IN * FOLD_OUT,
        transcendentals=0,
        bytes_accessed=(n_fold * FOLD_IN * 4                       # f32 input
                        + FOLD_IN * FOLD_OUT * 2                   # bf16 weight
                        + FOLD_OUT * 4                             # f32 bias
                        + n_fold * FOLD_OUT * np.dtype(out_dtype).itemsize),
    )

    out = pl.pallas_call(
        _linear_kernel,
        out_shape=jax.ShapeDtypeStruct((n_fold, FOLD_OUT), out_dtype),
        grid=grid,
        in_specs=[
            pl.BlockSpec((tm, FOLD_IN), lambda i: (i, 0)),         # streamed rows
            pl.BlockSpec((FOLD_IN, FOLD_OUT), lambda i: (0, 0)),   # resident W
            pl.BlockSpec((1, FOLD_OUT), lambda i: (0, 0)),         # resident bias
        ],
        out_specs=pl.BlockSpec((tm, FOLD_OUT), lambda i: (i, 0)),
        compiler_params=pltpu.CompilerParams(
            dimension_semantics=("parallel",)),
        cost_estimate=cost,
    )(x_fold, w_big, b_big)

    # (n_fold, 128) -> (n_fold*4, 32) is the same bytes (free reshape).
    out = out.reshape(n_fold * FOLD, HIDDEN)
    if rem:
        out = out[:N]                                # only on unaligned inputs
    return out.reshape(B, num_frames, HIDDEN)


if __name__ == "__main__":
    key = jax.random.PRNGKey(0)
    k_wave, k_params = jax.random.split(key)

    B, T = 2, 8 * FRAME_LEN          # batch=2, 1024 samples => 8 frames each
    waveform = jax.random.normal(k_wave, (B, T), jnp.float32)
    weight, bias, w_big, b_big = load_model(k_params)    # "model load", once

    out = base_wrapper_forward(waveform, w_big, b_big)
    out = jax.block_until_ready(out)

    # Reference: bf16 inputs/weights, f32 accumulate (matches kernel precision);
    # bf16 output rounding is absorbed by the tolerance.
    x_ref = waveform.reshape(B, T // FRAME_LEN, FRAME_LEN)
    x_ref = x_ref.astype(jnp.bfloat16).astype(jnp.float32)
    w_ref = weight.astype(jnp.bfloat16).astype(jnp.float32)
    ref = x_ref @ w_ref + bias

    assert out.shape == (B, T // FRAME_LEN, HIDDEN)
    assert out.dtype == jnp.bfloat16
    assert jnp.allclose(out.astype(jnp.float32), ref, atol=3e-2, rtol=3e-2)

    print("KERNEL_OK")
</pallas_src>

<mosaic_0001>
module attributes {stable_mosaic.version = 11 : i64} {
  func.func @_linear_kernel(%arg0: i32, %arg1: memref<4x512xf32, #tpu.memory_space<vmem>>, %arg2: memref<512x128xbf16, #tpu.memory_space<vmem>>, %arg3: memref<1x128xf32, #tpu.memory_space<vmem>>, %arg4: memref<4x128xbf16, #tpu.memory_space<vmem>>) attributes {dimension_semantics = [#tpu.dimension_semantics<parallel>], iteration_bounds = array<i64: 1>, scalar_prefetch = 0 : i64, scratch_operands = 0 : i64, tpu.core_type = #tpu.core_type<tc>, window_params = [{transform_indices = @transform_0, window_bounds = array<i64: 4, 512>}, {pipeline_mode = #tpu.pipeline_mode<synchronous>, transform_indices = @transform_1, window_bounds = array<i64: 512, 128>}, {pipeline_mode = #tpu.pipeline_mode<synchronous>, transform_indices = @transform_2, window_bounds = array<i64: 1, 128>}, {transform_indices = @transform_3, window_bounds = array<i64: 4, 128>}]} {
    %c0 = arith.constant 0 : index
    %c0_0 = arith.constant 0 : index
    %0 = vector.load %arg1[%c0, %c0_0] : memref<4x512xf32, #tpu.memory_space<vmem>>, vector<4x512xf32>
    %1 = arith.truncf %0 : vector<4x512xf32> to vector<4x512xbf16>
    %c0_1 = arith.constant 0 : index
    %c0_2 = arith.constant 0 : index
    %2 = vector.load %arg2[%c0_1, %c0_2] : memref<512x128xbf16, #tpu.memory_space<vmem>>, vector<512x128xbf16>
    %cst = arith.constant dense<0.000000e+00> : vector<4x128xf32>
    %3 = tpu.matmul %1, %2, %cst {dimension_numbers = #tpu.dot_dimension_numbers<[1], [0], [0], [1], [0, 0, 1, 1], [], []>} : vector<4x512xbf16>, vector<512x128xbf16>, vector<4x128xf32> -> vector<4x128xf32>
    %c0_3 = arith.constant 0 : index
    %c0_4 = arith.constant 0 : index
    %4 = vector.load %arg3[%c0_3, %c0_4] : memref<1x128xf32, #tpu.memory_space<vmem>>, vector<1x128xf32>
    %5 = vector.broadcast %4 : vector<1x128xf32> to vector<4x128xf32>
    %6 = arith.addf %3, %5 : vector<4x128xf32>
    %7 = arith.truncf %6 : vector<4x128xf32> to vector<4x128xbf16>
    %c0_5 = arith.constant 0 : index
    %c0_6 = arith.constant 0 : index
    %8 = vector.load %arg4[%c0_5, %c0_6] : memref<4x128xbf16, #tpu.memory_space<vmem>>, vector<4x128xbf16>
    tpu.vector_store %arg4[%c0_5, %c0_6], %7 {strides = array<i32>} : memref<4x128xbf16, #tpu.memory_space<vmem>>, vector<4x128xbf16>,
    return
  }
  func.func @transform_0(%arg0: i32) -> (i32, i32) {
    %c0_i32 = arith.constant 0 : i32
    %c0_i32_0 = arith.constant 0 : i32
    return %arg0, %c0_i32 : i32, i32
  }
  func.func @transform_1(%arg0: i32) -> (i32, i32) {
    %c0_i32 = arith.constant 0 : i32
    %c0_i32_0 = arith.constant 0 : i32
    %c0_i32_1 = arith.constant 0 : i32
    return %c0_i32, %c0_i32_0 : i32, i32
  }
  func.func @transform_2(%arg0: i32) -> (i32, i32) {
    %c0_i32 = arith.constant 0 : i32
    %c0_i32_0 = arith.constant 0 : i32
    %c0_i32_1 = arith.constant 0 : i32
    return %c0_i32, %c0_i32_0 : i32, i32
  }
  func.func @transform_3(%arg0: i32) -> (i32, i32) {
    %c0_i32 = arith.constant 0 : i32
    %c0_i32_0 = arith.constant 0 : i32
    return %arg0, %c0_i32 : i32, i32
  }
}

</mosaic_0001>

<bundles_post_ra>
// kernel: tpu_custom_call.1
= control target key start
LH: loop header
LB: loop body
LE: loop exit
PB: predicated region body
PF: predicated region fallthrough
CT: control target
= control target key end

     0   :  { %8 = vsyncpa [#allocation3], 0  ;;  %s674_s0 = inlined_call_operand.hbm [shape: f32[4,512], index: 0, kind: input, shape index: {}]   ;;  %s675_s1 = inlined_call_operand.hbm [shape: bf16[512,128], index: 1, kind: input, shape index: {}]   ;;  %s676_s2 = inlined_call_operand.vmem [shape: f32[1,128], index: 2, kind: input, shape index: {}]   ;;  %s677_s3 = inlined_call_operand.hbm [shape: bf16[4,128], index: 3, kind: output, shape index: {}]  }
   0x1   :  { %9 = vsyncpa [#allocation6], 0 }
   0x2   :  { %10 = vsyncpa [#allocation4], 0  ;;  %s603_s12 = smov [#allocation2]   ;;  %s604_s14 = smov [#allocation5]  }
   0x3   :  { %s17_s13 = sshll.u32 %s603_s12, 4  ;;  %s26_s15 = sshll.u32 %s604_s14, 4  ;;  %s18_s13 = int_to_ptr.vmem [resolvable:$true] %s17_s13  ;;  %s628_s15 = int_to_ptr.vmem [resolvable:$true] %s26_s15 }
   0x4   :  { %s531_s18 = scalar_lea.hbm %s674_s0, 256 }
   0x5   :  { %p532_p0 = scmp.ne.s32.totalorder %s674_s0, %s531_s18  ;;  %p535_p1 = scmp.lt.u32.totalorder %s531_s18, %s674_s0 }
   0x7   :  { %p537_p2 = pnand %p535_p1, %p532_p0 }
   0x9   :  { %540 = shalt.err (!%p537_p2)
}
   0xa   :  { %s541_s23 = scalar_lea.vmem %s18_s13, 256  ;;  %p546_p4 = scmp.lt.s32.totalorder %s18_s13, %s18_s13 }
   0xb   :  { %p542_p3 = scmp.ne.s32.totalorder %s18_s13, %s541_s23  ;;  %p547_p5 = scmp.lt.s32.totalorder %s541_s23, %s541_s23 }
   0xd   :  { %p548_p6 = por %p547_p5, %p546_p4 }
   0xf   :  { %p549_p7 = pnand %p548_p6, %p542_p3 }
  0x11   :  { %552 = shalt.err (!%p549_p7)
}
  0x12   :  { %20 = dma.hbm_to_vmem [thread:$0]  %s674_s0, 256, %s18_s13, [#allocation3]  }
  0x13   :  { %s553_s28 = scalar_lea.hbm %s675_s1, 4096 }
  0x14   :  { %p554_p8 = scmp.ne.s32.totalorder %s675_s1, %s553_s28  ;;  %p557_p9 = scmp.lt.u32.totalorder %s553_s28, %s675_s1 }
  0x16   :  { %p559_p10 = pnand %p557_p9, %p554_p8 }
  0x18   :  { %562 = shalt.err (!%p559_p10)
}
  0x19   :  { %s563_s6 = scalar_lea.vmem %s628_s15, 4096  ;;  %p568_p12 = scmp.lt.s32.totalorder %s628_s15, %s628_s15 }
  0x1a   :  { %p564_p11 = scmp.ne.s32.totalorder %s628_s15, %s563_s6  ;;  %p569_p13 = scmp.lt.s32.totalorder %s563_s6, %s563_s6 }
  0x1c   :  { %p570_p0 = por %p569_p13, %p568_p12 }
  0x1e   :  { %p571_p1 = pnand %p570_p0, %p564_p11 }
  0x20   :  { %574 = shalt.err (!%p571_p1)
}
  0x21   :  { %s605_s0 = smov 64   ;;  %s606_s7 = smov 4  }
  0x22   :  { %32 = dma.hbm_to_vmem [thread:$0]  %s675_s1, 4096, %s628_s15, [#allocation6], %s605_s0, %s605_s0, %s606_s7  }
  0x23   :  { %597 = dma.done.wait [#allocation3], 256  }
  0x24   :  { %598 = vsyncadd [#allocation3], 4294967040 }
  0x25   :  { %599 = dma.done.wait [#allocation6], 4096  }
  0x26   :  { %600 = vsyncadd [#allocation6], 4294963200  ;;  %v497_v0 = vld [vmem:[#allocation5 + $0x40] sm:$0xff]   ;;  %v501_v4 = vld [vmem:[#allocation5 + $0x48] sm:$0xff]   ;;  %s607_s11 = smov [#allocation7]  }
  0x27   :  { %v498_v1 = vld [vmem:[#allocation5 + $0xc0] sm:$0xff]   ;;  %448 = vmatprep.subr.bf16.mxu0 %v497_v0  ;;  %v502_v5 = vld [vmem:[#allocation5 + $0xc8] sm:$0xff]   ;;  %v505_v8 = vld [vmem:[#allocation5 + $0x50] sm:$0xff]   ;;  %s405_s12 = sshll.u32 %s607_s11, 4  ;;  %s406_s12 = int_to_ptr.vmem [resolvable:$true] %s405_s12 }
  0x28   :  { %v499_v2 = vld [vmem:[#allocation5] sm:$0xff]   ;;  %470 = vmatprep.subr.bf16.mxu1 %v498_v1  ;;  %v503_v6 = vld [vmem:[#allocation5 + $0x8] sm:$0xff]   ;;  %v506_v9 = vld [vmem:[#allocation5 + $0xd0] sm:$0xff]   ;;  %s575_s13 = scalar_lea.vmem %s406_s12, 32  ;;  %p580_p3 = scmp.lt.s32.totalorder %s406_s12, %s406_s12 }
  0x29   :  { %v500_v3 = vld [vmem:[#allocation5 + $0x80] sm:$0xff]   ;;  %449 = vmatpush3.bf16.msra.mxu0 %v499_v2  ;;  %v504_v7 = vld [vmem:[#allocation5 + $0x88] sm:$0xff]   ;;  %v507_v10 = vld [vmem:[#allocation5 + $0x10] sm:$0xff]   ;;  %p576_p2 = scmp.ne.s32.totalorder %s406_s12, %s575_s13  ;;  %p581_p4 = scmp.lt.s32.totalorder %s575_s13, %s575_s13 }
  0x2a   :  { %471 = vmatpush3.bf16.msra.mxu1 %v500_v3  ;;  %450 = vmatprep.subr.bf16.mxu0 %v501_v4  ;;  %v508_v11 = vld [vmem:[#allocation5 + $0x90] sm:$0xff]   ;;  %v509_v12 = vld [vmem:[#allocation5 + $0x58] sm:$0xff]   ;;  %v513_v16 = vld [vmem:[#allocation5 + $0x60] sm:$0xff]  }
  0x2b   :  { %472 = vmatprep.subr.bf16.mxu1 %v502_v5  ;;  %v510_v13 = vld [vmem:[#allocation5 + $0xd8] sm:$0xff]   ;;  %v514_v17 = vld [vmem:[#allocation5 + $0xe0] sm:$0xff]   ;;  %v517_v20 = vld [vmem:[#allocation5 + $0x68] sm:$0xff]   ;;  %p582_p5 = por %p581_p4, %p580_p3 }
  0x2c   :  { %v511_v14 = vld [vmem:[#allocation5 + $0x18] sm:$0xff]   ;;  %v515_v18 = vld [vmem:[#allocation5 + $0x20] sm:$0xff]   ;;  %v518_v21 = vld [vmem:[#allocation5 + $0xe8] sm:$0xff]  }
  0x2d   :  { %451 = vmatpush3.bf16.msra.mxu0 %v503_v6  ;;  %v512_v15 = vld [vmem:[#allocation5 + $0x98] sm:$0xff]   ;;  %v516_v19 = vld [vmem:[#allocation5 + $0xa0] sm:$0xff]   ;;  %v519_v22 = vld [vmem:[#allocation5 + $0x28] sm:$0xff]   ;;  %p583_p6 = pnand %p582_p5, %p576_p2 }
  0x2e   :  { %473 = vmatpush3.bf16.msra.mxu1 %v504_v7  ;;  %452 = vmatprep.subr.bf16.mxu0 %v505_v8  ;;  %v520_v23 = vld [vmem:[#allocation5 + $0xa8] sm:$0xff]   ;;  %v521_v24 = vld [vmem:[#allocation5 + $0x70] sm:$0xff]   ;;  %v525_v28 = vld [vmem:[#allocation5 + $0x78] sm:$0xff]  }
  0x2f   :  { %474 = vmatprep.subr.bf16.mxu1 %v506_v9  ;;  %v522_v25 = vld [vmem:[#allocation5 + $0xf0] sm:$0xff]   ;;  %v526_v29 = vld [vmem:[#allocation5 + $0xf8] sm:$0xff]  }
  0x30   :  { %v523_v26 = vld [vmem:[#allocation5 + $0x30] sm:$0xff]   ;;  %v527_v30 = vld [vmem:[#allocation5 + $0x38] sm:$0xff]  }
  0x31   :  { %453 = vmatpush3.bf16.msra.mxu0 %v507_v10  ;;  %v524_v27 = vld [vmem:[#allocation5 + $0xb0] sm:$0xff]   ;;  %v528_v31 = vld [vmem:[#allocation5 + $0xb8] sm:$0xff]  }
  0x32   :  { %475 = vmatpush3.bf16.msra.mxu1 %v508_v11  ;;  %454 = vmatprep.subr.bf16.mxu0 %v509_v12  ;;  %v42_v32 = vld [vmem:[#allocation2] sm:$0xff]  ;;  %v43_v33 = vld [vmem:[#allocation2 + $0x8] sm:$0xff] }
  0x33   :  { %476 = vmatprep.subr.bf16.mxu1 %v510_v13  ;;  %v46_v34 = vcombine.high %v42_v32, %v42_v32  ;;  %v47_v35 = vcombine.high %v43_v33, %v43_v33  ;;  %v50_v36 = vpack.c.bf16 %v42_v32, %v42_v32  ;;  %v52_v37 = vpack.c.bf16 %v43_v33, %v43_v33  ;;  %v415_v42 = vld [vmem:[%s676_s2] ss:$0 sm:$0xff] }
  0x35   :  { %455 = vmatpush3.bf16.msra.mxu0 %v511_v14  ;;  %v51_v38 = vpack.c.bf16 %v46_v34, %v46_v34  ;;  %v53_v39 = vpack.c.bf16 %v47_v35, %v47_v35 }
  0x36   :  { %477 = vmatpush3.bf16.msra.mxu1 %v512_v15  ;;  %456 = vmatprep.subr.bf16.mxu0 %v513_v16 }
  0x37   :  { %478 = vmatprep.subr.bf16.mxu1 %v514_v17  ;;  %349 = vmatprep.mubr.bf16.mxu0 %v51_v38 }
  0x38   :  { %389 = vmatprep.mubr.bf16.mxu1 %v53_v39 }
  0x39   :  { %457 = vmatpush3.bf16.msra.mxu0 %v515_v18 }
  0x3a   :  { %479 = vmatpush3.bf16.msra.mxu1 %v516_v19  ;;  %458 = vmatprep.subr.bf16.mxu0 %v517_v20 }
  0x3b   :  { %480 = vmatprep.subr.bf16.mxu1 %v518_v21 }
  0x3d   :  { %459 = vmatpush3.bf16.msra.mxu0 %v519_v22 }
  0x3e   :  { %481 = vmatpush3.bf16.msra.mxu1 %v520_v23  ;;  %460 = vmatprep.subr.bf16.mxu0 %v521_v24 }
  0x3f   :  { %482 = vmatprep.subr.bf16.mxu1 %v522_v25 }
  0x41   :  { %461 = vmatpush3.bf16.msra.mxu0 %v523_v26 }
  0x42   :  { %483 = vmatpush3.bf16.msra.mxu1 %v524_v27  ;;  %462 = vmatprep.subr.bf16.mxu0 %v525_v28 }
  0x43   :  { %484 = vmatprep.subr.bf16.mxu1 %v526_v29 }
  0x45   :  { %463 = vmatpush3.bf16.msra.mxu0 %v527_v30 }
  0x46   :  { %485 = vmatpush3.bf16.msra.mxu1 %v528_v31 }
  0x48   :  { %350 = vmatmul.mubr.bf16.vlgmr.msra.gmra.mrb[0].mxu0 %v50_v36 }
  0x49   :  { %390 = vmatmul.mubr.bf16.vlgmr.msra.gmra.mrb[0].mxu1 %v52_v37 }
 0x11b   :  { %v464_v40 = vpop.f32.mrb[0].mxu0 }
 0x11c   :  { %v486_v41 = vpop.f32.mrb[0].mxu1  ;;  %v465_v43 = vpop.f32.mrb[1].mxu0 }
 0x11d   :  { %v487_v44 = vpop.f32.mrb[1].mxu1  ;;  %v466_v45 = vadd.f32 %v465_v43, %v464_v40  ;;  %v467_v47 = vpop.f32.mrb[2].mxu0 }
 0x11e   :  { %v488_v46 = vadd.f32 %v487_v44, %v486_v41  ;;  %v489_v48 = vpop.f32.mrb[2].mxu1  ;;  %v468_v49 = vpop.f32.mrb[3].mxu0 }
 0x11f   :  { %v490_v50 = vpop.f32.mrb[3].mxu1  ;;  %v352_v51 = vadd.f32 %v466_v45, %v415_v42 }
 0x121   :  { %v392_v52 = vadd.f32 %v488_v46, %v352_v51 }
 0x123   :  { %v397_v53 = vpack.c.bf16 %v392_v52, %v392_v52 }
 0x125   :  { %398 = vst [vmem:[#allocation7] sm:$0x3] %v397_v53 }
 0x126   :  { %586 = shalt.err (!%p583_p6)
}
 0x127   :  { %s587_s15 = scalar_lea.hbm %s677_s3, 32 }
 0x128   :  { %p588_p7 = scmp.ne.s32.totalorder %s677_s3, %s587_s15  ;;  %p591_p8 = scmp.lt.u32.totalorder %s587_s15, %s677_s3 }
 0x12a   :  { %p593_p9 = pnand %p591_p8, %p588_p7 }
 0x12c   :  { %596 = shalt.err (!%p593_p9)
}
 0x12d   :  { %408 = dma.vmem_to_hbm [thread:$0]  %s406_s12, 32, %s677_s3, [#allocation4]  }
 0x12e   :  { %601 = dma.done.wait [#allocation4], 32  }
 0x12f   :  { %602 = vsyncadd [#allocation4], 4294967264 }
 0x130   :  { %412 = vsyncpa [#allocation3], 1 }
 0x131   :  { %413 = vsyncpa [#allocation6], 1 }
 0x132   :  { %414 = vsyncpa [#allocation4], 1 }

</bundles_post_ra>
